<compile_context>
chip_gen: v7x
topology: tpu7x:2x2x1
jax: 0.10.0
libtpu: 0.0.40
codegen_flags: <defaults>
</compile_context>

<pallas_src>
import jax
import jax.numpy as jnp
from jax import lax
from jax.experimental import pallas as pl
from jax.experimental.pallas import tpu as pltpu

LEAKY_SLOPE = 0.01            # nn.LeakyReLU() default
BN_EPS = 1e-5                 # nn.BatchNorm3d default
_VMEM_LIMIT = 64 * 1024 * 1024


def _im2col_3d(x, k, s, p):
    """x: (N, Cin, D, H, W) float32 -> patches (M, Cin*k^3), out spatial dims."""
    N, Cin, D, H, W = x.shape
    xp = jnp.pad(x, ((0, 0), (0, 0), (p, p), (p, p), (p, p)))
    Do = (D + 2 * p - k) // s + 1
    Ho = (H + 2 * p - k) // s + 1
    Wo = (W + 2 * p - k) // s + 1
    cols = []
    for kd in range(k):
        for kh in range(k):
            for kw in range(k):
                cols.append(xp[:, :, kd:kd + s * Do:s, kh:kh + s * Ho:s, kw:kw + s * Wo:s])
    pat = jnp.stack(cols, axis=0)                      # (k^3, N, Cin, Do, Ho, Wo)
    pat = jnp.transpose(pat, (1, 3, 4, 5, 2, 0))       # (N, Do, Ho, Wo, Cin, k^3)
    pat = pat.reshape(N * Do * Ho * Wo, Cin * k * k * k)
    return pat, (Do, Ho, Wo)


def _conv_stats_kernel(p_ref, w_ref, y_ref, sum_ref, sq_ref):
    """MXU matmul (bf16 in, f32 acc) + per-tile per-channel sum / sum-of-squares."""
    y = jnp.dot(p_ref[...], w_ref[...], preferred_element_type=jnp.float32)
    y_ref[...] = y
    sum_ref[...] = jnp.sum(y, axis=0, keepdims=True)[None]        # (1, 1, Cout)
    sq_ref[...] = jnp.sum(y * y, axis=0, keepdims=True)[None]     # (1, 1, Cout)


def _bn_lrelu_kernel(y_ref, scale_ref, shift_ref, o_ref):
    """Pre-folded BN affine (one FMA) + LeakyReLU."""
    z = y_ref[...] * scale_ref[...] + shift_ref[...]
    o_ref[...] = jnp.where(z >= 0, z, LEAKY_SLOPE * z)


def conv_norm_relu(x, weight, bias, gamma, beta, k=3, s=1, p=None, tm=512):
    """x: (N, Cin, D, H, W); weight: (Cout, Cin, k, k, k); returns (N, Cout, Do, Ho, Wo)."""
    del bias  # per-channel conv bias is exactly cancelled by BN's batch-mean subtraction
    if p is None:
        p = (k - 1) // 2
    N, Cin, D, H, W = x.shape
    Cout = weight.shape[0]

    patches, (Do, Ho, Wo) = _im2col_3d(x.astype(jnp.float32), k, s, p)
    M, K = patches.shape

    # Tile / padding bookkeeping: pad M up to a multiple of tm, K up to a multiple of 128.
    tm = min(tm, max(8, pl.cdiv(M, 8) * 8))
    M_pad = pl.cdiv(M, tm) * tm
    Kp = pl.cdiv(K, 128) * 128
    num_tiles = M_pad // tm

    patches_p = jnp.pad(patches, ((0, M_pad - M), (0, Kp - K))).astype(jnp.bfloat16)
    w_mat = weight.reshape(Cout, K).T.astype(jnp.float32)                 # (K, Cout)
    w_mat = jnp.pad(w_mat, ((0, Kp - K), (0, 0))).astype(jnp.bfloat16)    # (Kp, Cout)

    # ---- Kernel 1: conv matmul (bf16 -> f32) + per-tile channel sum / sum-of-squares ----
    y, psum, psq = pl.pallas_call(
        _conv_stats_kernel,
        out_shape=(jax.ShapeDtypeStruct((M_pad, Cout), jnp.float32),
                   jax.ShapeDtypeStruct((num_tiles, 1, Cout), jnp.float32),
                   jax.ShapeDtypeStruct((num_tiles, 1, Cout), jnp.float32)),
        grid_spec=pltpu.PrefetchScalarGridSpec(
            num_scalar_prefetch=0, grid=(num_tiles,),
            in_specs=[pl.BlockSpec((tm, Kp), lambda i: (i, 0)),
                      pl.BlockSpec((Kp, Cout), lambda i: (0, 0))],
            out_specs=(pl.BlockSpec((tm, Cout), lambda i: (i, 0)),
                       pl.BlockSpec((1, 1, Cout), lambda i: (i, 0, 0)),
                       pl.BlockSpec((1, 1, Cout), lambda i: (i, 0, 0)))),
        compiler_params=pltpu.CompilerParams(
            dimension_semantics=("parallel",),
            vmem_limit_bytes=_VMEM_LIMIT),
    )(patches_p, w_mat)

    # Cheap glue: batch stats from the per-tile partials (padded rows are exactly zero,
    # so dividing by the *true* M keeps the statistics exact).
    s1 = jnp.sum(psum, axis=(0, 1))                          # (Cout,)
    s2 = jnp.sum(psq, axis=(0, 1))                           # (Cout,)
    mean = s1 / M
    var = jnp.maximum(s2 / M - mean * mean, 0.0)             # biased variance (BN training)
    inv_std = lax.rsqrt(var + BN_EPS)
    scale = (inv_std * gamma.astype(jnp.float32)).reshape(1, Cout)
    shift = beta.astype(jnp.float32).reshape(1, Cout) - mean.reshape(1, Cout) * scale

    # ---- Kernel 2: y*scale + shift, LeakyReLU (lane-dense packed view when possible) ----
    packed = (128 % Cout == 0) and ((tm * Cout) % (128 * 8) == 0)
    if packed:
        R = 128 // Cout                                      # spatial rows packed per lane-row
        Mp2 = (M_pad * Cout) // 128
        tm2 = (tm * Cout) // 128
        y2 = y.reshape(Mp2, 128)
        scale2 = jnp.tile(scale, (1, R))                     # (1, 128)
        shift2 = jnp.tile(shift, (1, R))                     # (1, 128)
        out2 = pl.pallas_call(
            _bn_lrelu_kernel,
            out_shape=jax.ShapeDtypeStruct((Mp2, 128), jnp.float32),
            grid_spec=pltpu.PrefetchScalarGridSpec(
                num_scalar_prefetch=0, grid=(Mp2 // tm2,),
                in_specs=[pl.BlockSpec((tm2, 128), lambda i: (i, 0)),
                          pl.BlockSpec((1, 128), lambda i: (0, 0)),
                          pl.BlockSpec((1, 128), lambda i: (0, 0))],
                out_specs=pl.BlockSpec((tm2, 128), lambda i: (i, 0))),
            compiler_params=pltpu.CompilerParams(
                dimension_semantics=("parallel",),
                vmem_limit_bytes=_VMEM_LIMIT),
        )(y2, scale2, shift2)
        out_mat = out2.reshape(M_pad, Cout)
    else:
        out_mat = pl.pallas_call(
            _bn_lrelu_kernel,
            out_shape=jax.ShapeDtypeStruct((M_pad, Cout), jnp.float32),
            grid_spec=pltpu.PrefetchScalarGridSpec(
                num_scalar_prefetch=0, grid=(num_tiles,),
                in_specs=[pl.BlockSpec((tm, Cout), lambda i: (i, 0)),
                          pl.BlockSpec((1, Cout), lambda i: (0, 0)),
                          pl.BlockSpec((1, Cout), lambda i: (0, 0))],
                out_specs=pl.BlockSpec((tm, Cout), lambda i: (i, 0))),
            compiler_params=pltpu.CompilerParams(
                dimension_semantics=("parallel",),
                vmem_limit_bytes=_VMEM_LIMIT),
        )(y, scale, shift)

    out = out_mat[:M].reshape(N, Do, Ho, Wo, Cout)
    return jnp.transpose(out, (0, 4, 1, 2, 3))               # back to NCDHW


def reference(x, weight, bias, gamma, beta, k=3, s=1, p=None):
    """Pure-JAX f32 reference with the original module's semantics (conv bias included)."""
    if p is None:
        p = (k - 1) // 2
    N, Cin, D, H, W = x.shape
    Cout = weight.shape[0]
    patches, (Do, Ho, Wo) = _im2col_3d(x.astype(jnp.float32), k, s, p)
    w_mat = weight.reshape(Cout, -1).T.astype(jnp.float32)
    y = jnp.dot(patches, w_mat, precision=lax.Precision.HIGHEST) + bias.reshape(1, Cout)
    mean = y.mean(axis=0, keepdims=True)
    var = ((y - mean) ** 2).mean(axis=0, keepdims=True)
    z = (y - mean) / jnp.sqrt(var + BN_EPS) * gamma.reshape(1, Cout) + beta.reshape(1, Cout)
    z = jnp.where(z >= 0, z, LEAKY_SLOPE * z)
    return z.reshape(N, Do, Ho, Wo, Cout).transpose(0, 4, 1, 2, 3)


if __name__ == "__main__":
    N, Cin, Cout, D, H, W, k = 2, 4, 8, 8, 8, 8, 3

    key = jax.random.PRNGKey(0)
    kx, kw, kb, kg, kbt = jax.random.split(key, 5)
    x      = jax.random.normal(kx, (N, Cin, D, H, W), jnp.float32)
    weight = 0.1 * jax.random.normal(kw, (Cout, Cin, k, k, k), jnp.float32)
    bias   = 0.1 * jax.random.normal(kb, (Cout,), jnp.float32)
    gamma  = 1.0 + 0.1 * jax.random.normal(kg, (Cout,), jnp.float32)
    beta   = 0.1 * jax.random.normal(kbt, (Cout,), jnp.float32)

    out = conv_norm_relu(x, weight, bias, gamma, beta, k=k, s=1, p=None)
    out = jax.block_until_ready(out)

    ref = jax.block_until_ready(reference(x, weight, bias, gamma, beta, k=k))
    assert out.shape == (N, Cout, D, H, W), out.shape
    # Tolerance budget: the kernel feeds the MXU bf16 inputs (per perf review); with
    # K=108 terms the input-rounding error on the normalized output is O(5e-3) worst case,
    # so compare against the pure-f32 reference at 2e-2.
    err = jnp.max(jnp.abs(out - ref))
    assert jnp.allclose(out, ref, atol=2e-2, rtol=2e-2), f"max abs err = {err}"

    print("KERNEL_OK")
</pallas_src>

<mosaic_0001>
module attributes {stable_mosaic.version = 11 : i64} {
  func.func @_conv_stats_kernel(%arg0: i32, %arg1: memref<512x128xbf16, #tpu.memory_space<vmem>>, %arg2: memref<128x8xbf16, #tpu.memory_space<vmem>>, %arg3: memref<512x8xf32, #tpu.memory_space<vmem>>, %arg4: memref<1x1x8xf32, #tpu.memory_space<vmem>>, %arg5: memref<1x1x8xf32, #tpu.memory_space<vmem>>) attributes {dimension_semantics = [#tpu.dimension_semantics<parallel>], iteration_bounds = array<i64: 2>, scalar_prefetch = 0 : i64, scratch_operands = 0 : i64, tpu.core_type = #tpu.core_type<tc>, window_params = [{transform_indices = @transform_0, window_bounds = array<i64: 512, 128>}, {pipeline_mode = #tpu.pipeline_mode<synchronous>, transform_indices = @transform_1, window_bounds = array<i64: 128, 8>}, {transform_indices = @transform_2, window_bounds = array<i64: 512, 8>}, {transform_indices = @transform_3, window_bounds = array<i64: 1, 1, 8>}, {transform_indices = @transform_4, window_bounds = array<i64: 1, 1, 8>}]} {
    %c0 = arith.constant 0 : index
    %c0_0 = arith.constant 0 : index
    %0 = vector.load %arg1[%c0, %c0_0] : memref<512x128xbf16, #tpu.memory_space<vmem>>, vector<512x128xbf16>
    %c0_1 = arith.constant 0 : index
    %c0_2 = arith.constant 0 : index
    %1 = vector.load %arg2[%c0_1, %c0_2] : memref<128x8xbf16, #tpu.memory_space<vmem>>, vector<128x8xbf16>
    %cst = arith.constant dense<0.000000e+00> : vector<512x8xf32>
    %2 = tpu.matmul %0, %1, %cst {dimension_numbers = #tpu.dot_dimension_numbers<[1], [0], [0], [1], [0, 0, 1, 1], [], []>} : vector<512x128xbf16>, vector<128x8xbf16>, vector<512x8xf32> -> vector<512x8xf32>
    %c0_3 = arith.constant 0 : index
    %c0_4 = arith.constant 0 : index
    %3 = vector.load %arg3[%c0_3, %c0_4] : memref<512x8xf32, #tpu.memory_space<vmem>>, vector<512x8xf32>
    tpu.vector_store %arg3[%c0_3, %c0_4], %2 {strides = array<i32>} : memref<512x8xf32, #tpu.memory_space<vmem>>, vector<512x8xf32>,
    %cst_5 = arith.constant dense<0.000000e+00> : vector<8xf32>
    %4 = vector.multi_reduction <add>, %2, %cst_5 [0] : vector<512x8xf32> to vector<8xf32>
    %5 = vector.shape_cast %4 : vector<8xf32> to vector<1x8xf32>
    %6 = vector.shape_cast %5 : vector<1x8xf32> to vector<1x1x8xf32>
    %c0_6 = arith.constant 0 : index
    %c0_7 = arith.constant 0 : index
    %c0_8 = arith.constant 0 : index
    %7 = vector.load %arg4[%c0_6, %c0_7, %c0_8] : memref<1x1x8xf32, #tpu.memory_space<vmem>>, vector<1x1x8xf32>
    tpu.vector_store %arg4[%c0_6, %c0_7, %c0_8], %6 {strides = array<i32>} : memref<1x1x8xf32, #tpu.memory_space<vmem>>, vector<1x1x8xf32>,
    %8 = arith.mulf %2, %2 : vector<512x8xf32>
    %cst_9 = arith.constant dense<0.000000e+00> : vector<8xf32>
    %9 = vector.multi_reduction <add>, %8, %cst_9 [0] : vector<512x8xf32> to vector<8xf32>
    %10 = vector.shape_cast %9 : vector<8xf32> to vector<1x8xf32>
    %11 = vector.shape_cast %10 : vector<1x8xf32> to vector<1x1x8xf32>
    %c0_10 = arith.constant 0 : index
    %c0_11 = arith.constant 0 : index
    %c0_12 = arith.constant 0 : index
    %12 = vector.load %arg5[%c0_10, %c0_11, %c0_12] : memref<1x1x8xf32, #tpu.memory_space<vmem>>, vector<1x1x8xf32>
    tpu.vector_store %arg5[%c0_10, %c0_11, %c0_12], %11 {strides = array<i32>} : memref<1x1x8xf32, #tpu.memory_space<vmem>>, vector<1x1x8xf32>,
    return
  }
  func.func @transform_0(%arg0: i32) -> (i32, i32) {
    %c0_i32 = arith.constant 0 : i32
    %c0_i32_0 = arith.constant 0 : i32
    return %arg0, %c0_i32 : i32, i32
  }
  func.func @transform_1(%arg0: i32) -> (i32, i32) {
    %c0_i32 = arith.constant 0 : i32
    %c0_i32_0 = arith.constant 0 : i32
    %c0_i32_1 = arith.constant 0 : i32
    return %c0_i32, %c0_i32_0 : i32, i32
  }
  func.func @transform_2(%arg0: i32) -> (i32, i32) {
    %c0_i32 = arith.constant 0 : i32
    %c0_i32_0 = arith.constant 0 : i32
    return %arg0, %c0_i32 : i32, i32
  }
  func.func @transform_3(%arg0: i32) -> (i32, i32, i32) {
    %c0_i32 = arith.constant 0 : i32
    %c0_i32_0 = arith.constant 0 : i32
    %c0_i32_1 = arith.constant 0 : i32
    return %arg0, %c0_i32, %c0_i32_0 : i32, i32, i32
  }
  func.func @transform_4(%arg0: i32) -> (i32, i32, i32) {
    %c0_i32 = arith.constant 0 : i32
    %c0_i32_0 = arith.constant 0 : i32
    %c0_i32_1 = arith.constant 0 : i32
    return %arg0, %c0_i32, %c0_i32_0 : i32, i32, i32
  }
}

</mosaic_0001>

<bundles_post_ra>
// kernel: tpu_custom_call.1
= control target key start
LH: loop header
LB: loop body
LE: loop exit
PB: predicated region body
PF: predicated region fallthrough
CT: control target
= control target key end

     0   :  { %10 = vsyncpa [#allocation3], 0  ;;  %s2739_s0 = inlined_call_operand.hbm [shape: bf16[1024,128], index: 0, kind: input, shape index: {}]   ;;  %s2740_s1 = inlined_call_operand.hbm [shape: bf16[128,8], index: 1, kind: input, shape index: {}]   ;;  %s2741_s2 = inlined_call_operand.hbm [shape: f32[1024,8], index: 2, kind: output, shape index: {0}]   ;;  %s2742_s3 = inlined_call_operand.hbm [shape: f32[2,1,8], index: 3, kind: output, shape index: {1}]   ;;  %s2743_s4 = inlined_call_operand.hbm [shape: f32[2,1,8], index: 4, kind: output, shape index: {2}]  }
   0x1   :  { %12 = vsyncpa [#allocation3 + $0x1], 0 }
   0x2   :  { %13 = vsyncpa [#allocation6], 0 }
   0x3   :  { %14 = vsyncpa [#allocation4], 0 }
   0x4   :  { %16 = vsyncpa [#allocation4 + $0x1], 0 }
   0x5   :  { %17 = vsyncpa [#allocation9], 0 }
   0x6   :  { %19 = vsyncpa [#allocation9 + $0x1], 0  ;;  %s1972_s15 = smov 0   ;;  %s1974_s16 = smov 0  }
   0x7   :  { %s1976_s17 = smov 0   ;;  %s1978_s18 = smov 0  }
   0x8 LB: > { %s1993_s19 = sadd.s32 4294967295, %s1936_s18   ;;  %s1441_s20 = sadd.s32 4294967294, %s1936_s18   ;;  %s1936_s18 = sphi %s1978_s18, %s2763_s18   ;;  %s1932_s17 = sphi %s1976_s17, %s2762_s17   ;;  %s1928_s16 = sphi %s1974_s16, %s2761_s16   ;;  %s1924_s15 = sphi %s1972_s15, %s2760_s15  }
   0x9   : > { %p45_p0 = scmp.ne.s32.totalorder %s1928_s16, %s1924_s15  ;;  %p2744_p1 = scmp.eq.s32.totalorder %s1993_s19, 0 }
   0xa   : > { %p96_p3 = scmp.eq.s32.totalorder %s1441_s20, 1  ;;  %p1442_p5 = scmp.ge.s32.totalorder %s1936_s18, 1 }
   0xb   : > { %p2004_p4 = por %p2744_p1, %p45_p0  ;;  %p155_p7 = scmp.lt.s32.totalorder %s1936_s18, 3 }
   0xc   : > { %p2009_p6 = por %p96_p3, %p45_p0  ;;  %s1938_s24 = smov [#allocation5]  }
   0xd   : > { %s2747_s21 = scalar_select %p2004_p4, 1, 0 }
   0xe   : > { %s2748_s22 = scalar_select %p2009_p6, 1, 0 }
   0xf   : > { %p2014_p8 = pnand %p1442_p5, %p155_p7  ;;  %s167_s25 = sshll.u32 %s1938_s24, 4  ;;  %s2018_s25 = int_to_ptr.vmem [resolvable:$true] %s167_s25 }
  0x10   : > { %s2030_s27 = sadd.s32 1, %s1936_s18   ;;  %s32_s28 = sadd.s32 1, %s1932_s17 }
  0x11   : > { %s2749_s23 = scalar_select %p2014_p8, 1, 0 }
  0x12   : > { %p1649_p9 = pneg %p2014_p8  ;;  %s29_s29 = ssub.s32 %s1936_s18, %s2030_s27 }
  0x13   : > { %s1748_s6 = scalar_lea.hbm %s2740_s1, 1024 }
  0x14   : > { %p2025_p11 = pnand %p1649_p9, %p2744_p1  ;;  %p1749_p12 = scmp.ne.s32.totalorder %s2740_s1, %s1748_s6 }
  0x15   : > { %p1755_p5 = scmp.lt.u32.totalorder %s1748_s6, %s2740_s1 }
  0x16   : > { %p1750_p13 = pneg %p2025_p11 }
  0x18   : > { %p1751_p0 = pnand %p1750_p13, %p1749_p12 }
  0x1a   : > { %p1752_p3 = pneg %p1751_p0 }
  0x1c   : > { %p1757_p7 = pnand %p1755_p5, %p1752_p3 }
  0x1e   : > { %1760 = shalt.err (!%p1757_p7)
}
  0x1f   : > { %s1761_s11 = scalar_lea.vmem %s2018_s25, 1024  ;;  %p1769_p2 = scmp.lt.s32.totalorder %s2018_s25, %s2018_s25 }
  0x20   : > { %p1762_p9 = scmp.ne.s32.totalorder %s2018_s25, %s1761_s11  ;;  %p1770_p6 = scmp.lt.s32.totalorder %s1761_s11, %s1761_s11 }
  0x22   : > { %p1764_p10 = pnand %p1762_p9, %p1750_p13  ;;  %p1771_p4 = por %p1770_p6, %p1769_p2 }
  0x24   : > { %p1765_p1 = pneg %p1764_p10 }
  0x26   : > { %p1772_p8 = pnand %p1771_p4, %p1765_p1 }
  0x28   : > { %1775 = shalt.err (!%p1772_p8)
}
  0x29   : > { %s1939_s12 = smov 64   ;;  %s1940_s13 = smov 4  }
  0x2a   : > { %1652 = dma.hbm_to_vmem [thread:$0]  (!%p2025_p11), %s2740_s1, 1024, %s2018_s25, [#allocation6], %s1939_s12, %s1939_s12, %s1940_s13  }
  0x2b   : > { %p30_p1 = scmp.eq.s32.totalorder %s29_s29, 0  ;;  %p39_p2 = scmp.ne.s32.totalorder %s1932_s17, %s1928_s16 }
  0x2c   : > { %p40_p4 = scmp.eq.s32.totalorder %s1936_s18, 0  ;;  %p1668_p6 = scmp.lt.s32.totalorder %s1936_s18, 2 }
  0x2d   : > { %s2064_s30 = scalar_select %p30_p1, %s1932_s17, %s32_s28  }
  0x2e   : > { %p41_p8 = por %p40_p4, %p39_p2  ;;  %p2751_p10 = scmp.eq.s32.totalorder %s1993_s19, 1 }
  0x2f   : > { %s181_s26 = sand.u32 1, %s1932_s17   ;;  %s1499_s6 = sshll.u32 %s1936_s18, 12 }
  0x30   : > { %p2068_p12 = por %p2751_p10, %p39_p2  ;;  %s1445_s7 = sshll.u32 %s181_s26, 8 }
  0x31   : > { %s2077_s10 = scalar_lea.hbm %s2739_s0, %s1499_s6  ;;  %s185_s25 = scalar_lea.vmem [#allocation2], %s1445_s7 }
  0x32   : > { %s192_s28 = sshll.u32 %s185_s25, 4  ;;  %p2079_p11 = pnand %p1668_p6, %p41_p8  ;;  %s2083_s28 = int_to_ptr.vmem [resolvable:$true] %s192_s28 }
  0x33   : > { %s2085_s11 = scalar_lea.sflag [#allocation3], %s181_s26  ;;  %s1776_s14 = scalar_lea.hbm %s2077_s10, 4096 }
  0x34   : > { %p1777_p13 = scmp.ne.s32.totalorder %s2077_s10, %s1776_s14  ;;  %p1778_p0 = pneg %p2079_p11 }
  0x35   : > { %s1781_s7 = scalar_lea.hbm %s2739_s0, 8192  ;;  %p1782_p7 = scmp.lt.u32.totalorder %s2077_s10, %s2739_s0 }
  0x36   : > { %p1779_p3 = pnand %p1778_p0, %p1777_p13  ;;  %p1783_p9 = scmp.lt.u32.totalorder %s1781_s7, %s1776_s14 }
  0x37   : > { %p1785_p2 = scmp.lt.u32.totalorder %s1776_s14, %s2077_s10 }
  0x38   : > { %p1780_p5 = pneg %p1779_p3  ;;  %p1784_p1 = por %p1783_p9, %p1782_p7 }
  0x3a   : > { %p1786_p4 = por %p1785_p2, %p1784_p1 }
  0x3c   : > { %p1787_p6 = pnand %p1786_p4, %p1780_p5 }
  0x3e   : > { %1790 = shalt.err (!%p1787_p6)
}
  0x3f   : > { %s1791_s26 = scalar_lea.vmem %s2083_s28, 4096  ;;  %s1941_s25 = smov [#allocation2]  }
  0x40   : > { %p1792_p8 = scmp.ne.s32.totalorder %s2083_s28, %s1791_s26  ;;  %s1796_s24 = sshll.u32 %s1941_s25, 4  ;;  %s1797_s24 = int_to_ptr.vmem [resolvable:$false] %s1796_s24 }
  0x41   : > { %s1798_s6 = scalar_lea.vmem %s1797_s24, 8192  ;;  %p1799_p3 = scmp.lt.s32.totalorder %s2083_s28, %s1797_s24 }
  0x42   : > { %p1794_p10 = pnand %p1792_p8, %p1778_p0  ;;  %p1800_p7 = scmp.lt.s32.totalorder %s1798_s6, %s1791_s26 }
  0x44   : > { %p1795_p13 = pneg %p1794_p10  ;;  %p1801_p9 = por %p1800_p7, %p1799_p3 }
  0x46   : > { %p1802_p1 = pnand %p1801_p9, %p1795_p13 }
  0x48   : > { %1805 = shalt.err (!%p1802_p1)
}
  0x49   : > { %1656 = dma.hbm_to_vmem [thread:$0]  (!%p2079_p11), %s2077_s10, 4096, %s2083_s28, %s2085_s11, %s1939_s12, %s1939_s12, %s1940_s13  }
  0x4a   : > { %p2754_p0 = scmp.ne.s32.totalorder %s2749_s23, 0 }
  0x4b   : > { %s2119_s14 = sand.u32 (!%p2754_p0), 1, %s1928_s16   ;;  %p2755_p5 = scmp.ne.s32.totalorder (!%p2754_p0), %s2747_s21, 0 }
  0x4c   : > { %204 = sbr.rel (%p2754_p0) target bundleno = 522 (0x20a), region = 28  ;;  %s1449_s7 = sshll.u32 (!%p2754_p0), %s2119_s14, 8 }
  0x4d   : > { %s207_s8 = scalar_lea.sflag (!%p2754_p0), [#allocation3], %s2119_s14  ;;  %s2123_s9 = scalar_lea.vmem (!%p2754_p0), [#allocation2], %s1449_s7 }
  0x53   : > { %1907 = dma.done.wait (%p2755_p5), %s207_s8, 4096  }
  0x54   : > { %1909 = vsyncadd (%p2755_p5), %s207_s8, 4294963200  ;;  %p2756_p11 = scmp.eq.s32.totalorder %s1993_s19, 0 }
  0x56   : > { %1911 = dma.done.wait (%p2756_p11), [#allocation6], 1024   ;;  %p2757_p2 = pmov %p2756_p11 }
  0x57   : > { %v1708_v0 = vld [vmem:[#allocation5] sm:$0xff]   ;;  %v1709_v1 = vld [vmem:[#allocation5 + $0x8] sm:$0xff]   ;;  %v1710_v2 = vld [vmem:[#allocation5 + $0x10] sm:$0xff]   ;;  %s1451_s21 = sshll.u32 %s2119_s14, 9  ;;  %vm859_vm0 = vcmask 64512   ;;  %s1500_s12 = sshll.u32 %s1993_s19, 13 }
  0x58   : > { %1913 = vsyncadd (%p2757_p2), [#allocation6], 4294966272  ;;  %1541 = vmatprep.subr.bf16.mxu0 %v1708_v0  ;;  %1621 = vmatprep.subr.bf16.mxu1 %v1708_v0  ;;  %v1711_v3 = vld [vmem:[#allocation5 + $0x18] sm:$0xff]   ;;  %v1716_v4 = vld [vmem:[%s2123_s9] sm:$0xff]   ;;  %s2168_s23 = scalar_lea.vmem [#allocation7], %s1451_s21  ;;  %s2433_s29 = scalar_lea.hbm %s2741_s2, %s1500_s12 }
  0x59   : > { %1542 = vmatpush3.bf16.msra.mxu0 %v1708_v0  ;;  %1629 = vmatpush3.bf16.msra.mxu1 %v1708_v0  ;;  %v1712_v5 = vld [vmem:[#allocation5 + $0x20] sm:$0xff]   ;;  %v1713_v6 = vld [vmem:[#allocation5 + $0x28] sm:$0xff]   ;;  %v1714_v7 = vld [vmem:[#allocation5 + $0x30] sm:$0xff]   ;;  %s1279_s13 = sshll.u32 %s2168_s23, 4  ;;  %s1258_s11 = scalar_lea.sflag [#allocation4], %s2119_s14  ;;  %s2435_s13 = int_to_ptr.vmem [resolvable:$true] %s1279_s13 }
  0x5a   : > { %1543 = vmatprep.subr.bf16.mxu0 %v1709_v1  ;;  %1622 = vmatprep.subr.bf16.mxu1 %v1709_v1  ;;  %v1715_v8 = vld [vmem:[#allocation5 + $0x38] sm:$0xff]   ;;  %v1732_v9 = vld [vmem:[%s2123_s9 + $0x80] sm:$0xff]   ;;  %v1717_v10 = vld [vmem:[%s2123_s9 + $0x8] sm:$0xff]   ;;  %s1806_s26 = scalar_lea.vmem %s2435_s13, 8192  ;;  %s1942_s25 = smov [#allocation7]  }
  0x5b   : > { %1557 = vmatprep.mubr.bf16.mxu0 %v1716_v4  ;;  %1589 = vmatprep.mubr.bf16.mxu1 %v1732_v9  ;;  %v1718_v11 = vld [vmem:[%s2123_s9 + $0x10] sm:$0xff]   ;;  %v1733_v12 = vld [vmem:[%s2123_s9 + $0x88] sm:$0xff]   ;;  %v1719_v14 = vld [vmem:[%s2123_s9 + $0x18] sm:$0xff]   ;;  %p1807_p4 = scmp.ne.s32.totalorder %s2435_s13, %s1806_s26  ;;  %s1810_s24 = sshll.u32 %s1942_s25, 4  ;;  %s1811_s24 = int_to_ptr.vmem [resolvable:$false] %s1810_s24 }
  0x5c   : > { %v1734_v13 = vld [vmem:[%s2123_s9 + $0x90] sm:$0xff]   ;;  %v1720_v15 = vld [vmem:[%s2123_s9 + $0x20] sm:$0xff]   ;;  %v1735_v16 = vld [vmem:[%s2123_s9 + $0x98] sm:$0xff]   ;;  %s1812_s6 = scalar_lea.vmem %s1811_s24, 16384  ;;  %p1813_p10 = scmp.lt.s32.totalorder %s2435_s13, %s1811_s24 }
  0x5d   : > { %1544 = vmatpush3.bf16.msra.mxu0 %v1709_v1  ;;  %1630 = vmatpush3.bf16.msra.mxu1 %v1709_v1  ;;  %v1736_v17 = vld [vmem:[%s2123_s9 + $0xa0] sm:$0xff]   ;;  %v1721_v18 = vld [vmem:[%s2123_s9 + $0x28] sm:$0xff]   ;;  %v1722_v20 = vld [vmem:[%s2123_s9 + $0x30] sm:$0xff]   ;;  %p1808_p6 = pnand %p1807_p4, %p2068_p12  ;;  %p1814_p13 = scmp.lt.s32.totalorder %s1812_s6, %s1806_s26 }
  0x5e   : > { %1545 = vmatprep.subr.bf16.mxu0 %v1710_v2  ;;  %1623 = vmatprep.subr.bf16.mxu1 %v1710_v2  ;;  %v1737_v19 = vld [vmem:[%s2123_s9 + $0xa8] sm:$0xff]   ;;  %v1738_v21 = vld [vmem:[%s2123_s9 + $0xb0] sm:$0xff]   ;;  %v1723_v22 = vld [vmem:[%s2123_s9 + $0x38] sm:$0xff]  }
  0x5f   : > { %v1739_v23 = vld [vmem:[%s2123_s9 + $0xb8] sm:$0xff]   ;;  %v1724_v24 = vld [vmem:[%s2123_s9 + $0x40] sm:$0xff]   ;;  %v1725_v26 = vld [vmem:[%s2123_s9 + $0x48] sm:$0xff]   ;;  %p1809_p8 = pneg %p1808_p6  ;;  %p1815_p3 = por %p1814_p13, %p1813_p10 }
  0x60   : > { %v1740_v25 = vld [vmem:[%s2123_s9 + $0xc0] sm:$0xff]   ;;  %v1741_v27 = vld [vmem:[%s2123_s9 + $0xc8] sm:$0xff]   ;;  %v1726_v28 = vld [vmem:[%s2123_s9 + $0x50] sm:$0xff]  }
  0x61   : > { %1546 = vmatpush3.bf16.msra.mxu0 %v1710_v2  ;;  %1631 = vmatpush3.bf16.msra.mxu1 %v1710_v2  ;;  %v1742_v29 = vld [vmem:[%s2123_s9 + $0xd0] sm:$0xff]   ;;  %v1727_v30 = vld [vmem:[%s2123_s9 + $0x58] sm:$0xff]   ;;  %v1728_v32 = vld [vmem:[%s2123_s9 + $0x60] sm:$0xff]   ;;  %p1816_p7 = pnand %p1815_p3, %p1809_p8 }
  0x62   : > { %1547 = vmatprep.subr.bf16.mxu0 %v1711_v3  ;;  %1624 = vmatprep.subr.bf16.mxu1 %v1711_v3  ;;  %v1743_v31 = vld [vmem:[%s2123_s9 + $0xd8] sm:$0xff]   ;;  %v1744_v33 = vld [vmem:[%s2123_s9 + $0xe0] sm:$0xff]   ;;  %v1729_v34 = vld [vmem:[%s2123_s9 + $0x68] sm:$0xff]  }
  0x63   : > { %v1745_v35 = vld [vmem:[%s2123_s9 + $0xe8] sm:$0xff]   ;;  %v1730_v36 = vld [vmem:[%s2123_s9 + $0x70] sm:$0xff]   ;;  %v1731_v38 = vld [vmem:[%s2123_s9 + $0x78] sm:$0xff]  }
  0x64   : > { %v1746_v37 = vld [vmem:[%s2123_s9 + $0xf0] sm:$0xff]   ;;  %v1747_v39 = vld [vmem:[%s2123_s9 + $0xf8] sm:$0xff]  }
  0x65   : > { %1548 = vmatpush3.bf16.msra.mxu0 %v1711_v3  ;;  %1632 = vmatpush3.bf16.msra.mxu1 %v1711_v3 }
  0x66   : > { %1549 = vmatprep.subr.bf16.mxu0 %v1712_v5  ;;  %1625 = vmatprep.subr.bf16.mxu1 %v1712_v5 }
  0x69   : > { %1550 = vmatpush3.bf16.msra.mxu0 %v1712_v5  ;;  %1633 = vmatpush3.bf16.msra.mxu1 %v1712_v5 }
  0x6a   : > { %1551 = vmatprep.subr.bf16.mxu0 %v1713_v6  ;;  %1626 = vmatprep.subr.bf16.mxu1 %v1713_v6 }
  0x6d   : > { %1552 = vmatpush3.bf16.msra.mxu0 %v1713_v6  ;;  %1634 = vmatpush3.bf16.msra.mxu1 %v1713_v6 }
  0x6e   : > { %1553 = vmatprep.subr.bf16.mxu0 %v1714_v7  ;;  %1627 = vmatprep.subr.bf16.mxu1 %v1714_v7 }
  0x71   : > { %1554 = vmatpush3.bf16.msra.mxu0 %v1714_v7  ;;  %1635 = vmatpush3.bf16.msra.mxu1 %v1714_v7 }
  0x72   : > { %1555 = vmatprep.subr.bf16.mxu0 %v1715_v8  ;;  %1628 = vmatprep.subr.bf16.mxu1 %v1715_v8 }
  0x75   : > { %1556 = vmatpush3.bf16.msra.mxu0 %v1715_v8  ;;  %1636 = vmatpush3.bf16.msra.mxu1 %v1715_v8 }
  0x78   : > { %1558 = vmatmul.mubr.bf16.vlgmr.msra.gmra.mrb[0].mxu0 %v1717_v10  ;;  %1590 = vmatmul.mubr.bf16.vlgmr.msra.gmra.mrb[0].mxu1 %v1733_v12 }
  0x79   : > { %1561 = vmatprep.mubr.bf16.mxu0 %v1718_v11  ;;  %1593 = vmatprep.mubr.bf16.mxu1 %v1734_v13 }
  0x80   : > { %1562 = vmatmul.mubr.bf16.gmra.mrb[4].mxu0 %v1719_v14  ;;  %1594 = vmatmul.mubr.bf16.gmra.mrb[4].mxu1 %v1735_v16 }
  0x81   : > { %1565 = vmatprep.mubr.bf16.mxu0 %v1720_v15  ;;  %1597 = vmatprep.mubr.bf16.mxu1 %v1736_v17 }
  0x88   : > { %1566 = vmatmul.mubr.bf16.gmra.mrb[8].mxu0 %v1721_v18  ;;  %1598 = vmatmul.mubr.bf16.gmra.mrb[8].mxu1 %v1737_v19 }
  0x89   : > { %1569 = vmatprep.mubr.bf16.mxu0 %v1722_v20  ;;  %1601 = vmatprep.mubr.bf16.mxu1 %v1738_v21 }
  0x90   : > { %1570 = vmatmul.mubr.bf16.gmra.mrb[12].mxu0 %v1723_v22  ;;  %1602 = vmatmul.mubr.bf16.gmra.mrb[12].mxu1 %v1739_v23 }
  0x91   : > { %1573 = vmatprep.mubr.bf16.mxu0 %v1724_v24  ;;  %1605 = vmatprep.mubr.bf16.mxu1 %v1740_v25 }
  0x98   : > { %1574 = vmatmul.mubr.bf16.gmra.mrb[16].mxu0 %v1725_v26  ;;  %1606 = vmatmul.mubr.bf16.gmra.mrb[16].mxu1 %v1741_v27 }
  0x99   : > { %1577 = vmatprep.mubr.bf16.mxu0 %v1726_v28  ;;  %1609 = vmatprep.mubr.bf16.mxu1 %v1742_v29 }
  0xa0   : > { %1578 = vmatmul.mubr.bf16.gmra.mrb[20].mxu0 %v1727_v30  ;;  %1610 = vmatmul.mubr.bf16.gmra.mrb[20].mxu1 %v1743_v31 }
  0xa1   : > { %1581 = vmatprep.mubr.bf16.mxu0 %v1728_v32  ;;  %1613 = vmatprep.mubr.bf16.mxu1 %v1744_v33 }
  0xa8   : > { %1582 = vmatmul.mubr.bf16.gmra.mrb[24].mxu0 %v1729_v34  ;;  %1614 = vmatmul.mubr.bf16.gmra.mrb[24].mxu1 %v1745_v35 }
  0xa9   : > { %1585 = vmatprep.mubr.bf16.mxu0 %v1730_v36  ;;  %1617 = vmatprep.mubr.bf16.mxu1 %v1746_v37 }
  0xb0   : > { %1586 = vmatmul.mubr.bf16.gmra.mrb[28].mxu0 %v1731_v38  ;;  %1618 = vmatmul.mubr.bf16.gmra.mrb[28].mxu1 %v1747_v39 }
 0x14b   : > { %v1559_v40 = vpop.f32.mrb[0].mxu0  ;;  %v2166_v41 = vpop.f32.mrb[0].mxu1 }
 0x14c   : > { %862 = vst.msk [vmem:[%s2168_s23 + $0x10] sm:$0xff] %vm859_vm0, %v1559_v40  ;;  %v604_v42 = vpop.f32.mrb[1].mxu0  ;;  %894 = vst.msk [vmem:[%s2168_s23 + $0x110] sm:$0xff] %vm859_vm0, %v2166_v41  ;;  %v2175_v43 = vpop.f32.mrb[1].mxu1  ;;  %v1061_v49 = vmul.f32 %v1559_v40, %v1559_v40  ;;  %v927_v54 = vsel %vm859_vm0, %v1559_v40, 0.0 }
 0x14d   : > { %860 = vst.msk [vmem:[%s2168_s23] sm:$0xff] %vm859_vm0, %v604_v42  ;;  %v1059_v44 = vmul.f32 %v604_v42, %v604_v42  ;;  %v1560_v45 = vpop.f32.mrb[2].mxu0  ;;  %892 = vst.msk [vmem:[%s2168_s23 + $0x100] sm:$0xff] %vm859_vm0, %v2175_v43  ;;  %v2182_v46 = vpop.f32.mrb[2].mxu1  ;;  %v924_v50 = vsel %vm859_vm0, %v604_v42, 0.0 }
 0x14e   : > { %863 = vst.msk [vmem:[%s2168_s23 + $0x18] sm:$0xff] %vm859_vm0, %v1560_v45  ;;  %v607_v47 = vpop.f32.mrb[3].mxu0  ;;  %895 = vst.msk [vmem:[%s2168_s23 + $0x118] sm:$0xff] %vm859_vm0, %v2182_v46  ;;  %v2189_v48 = vpop.f32.mrb[3].mxu1  ;;  %v1062_v56 = vmul.f32 %v1560_v45, %v1560_v45  ;;  %v1126_v60 = vsel %vm859_vm0, %v1061_v49, 0.0  ;;  %v929_v61 = vsel %vm859_vm0, %v1560_v45, 0.0 }
 0x14f   : > { %861 = vst.msk [vmem:[%s2168_s23 + $0x8] sm:$0xff] %vm859_vm0, %v607_v47  ;;  %v925_v51 = vsel %vm859_vm0, %v607_v47, 0.0  ;;  %v1060_v52 = vmul.f32 %v607_v47, %v607_v47  ;;  %893 = vst.msk [vmem:[%s2168_s23 + $0x108] sm:$0xff] %vm859_vm0, %v2189_v48  ;;  %v1123_v55 = vsel %vm859_vm0, %v1059_v44, 0.0 }
 0x150   : > { %v926_v53 = vadd.f32 %v925_v51, %v924_v50  ;;  %v1128_v4 = vsel %vm859_vm0, %v1062_v56, 0.0 }
 0x151   : > { %v1124_v57 = vsel %vm859_vm0, %v1060_v52, 0.0 }
 0x152   : > { %v928_v58 = vadd.f32 %v927_v54, %v926_v53  ;;  %v1125_v59 = vadd.f32 %v1124_v57, %v1123_v55 }
 0x153   : > { %v1563_v62 = vpop.f32.mrb[4].mxu0  ;;  %v2203_v63 = vpop.f32.mrb[4].mxu1 }
 0x154   : > { %v1127_v0 = vadd.f32 %v1126_v60, %v1125_v59  ;;  %866 = vst.msk [vmem:[%s2168_s23 + $0x30] sm:$0xff] %vm859_vm0, %v1563_v62  ;;  %v620_v1 = vpop.f32.mrb[5].mxu0  ;;  %v930_v2 = vadd.f32 %v929_v61, %v928_v58  ;;  %898 = vst.msk [vmem:[%s2168_s23 + $0x130] sm:$0xff] %vm859_vm0, %v2203_v63  ;;  %v2210_v3 = vpop.f32.mrb[5].mxu1  ;;  %v1065_v13 = vmul.f32 %v1563_v62, %v1563_v62  ;;  %v935_v19 = vsel %vm859_vm0, %v1563_v62, 0.0 }
 0x155   : > { %864 = vst.msk [vmem:[%s2168_s23 + $0x20] sm:$0xff] %vm859_vm0, %v620_v1  ;;  %v931_v5 = vsel %vm859_vm0, %v620_v1, 0.0  ;;  %v1063_v6 = vmul.f32 %v620_v1, %v620_v1  ;;  %v1564_v7 = vpop.f32.mrb[6].mxu0  ;;  %896 = vst.msk [vmem:[%s2168_s23 + $0x120] sm:$0xff] %vm859_vm0, %v2210_v3  ;;  %v2219_v8 = vpop.f32.mrb[6].mxu1 }
 0x156   : > { %v932_v9 = vadd.f32 %v931_v5, %v930_v2  ;;  %v1129_v10 = vadd.f32 %v1128_v4, %v1127_v0  ;;  %867 = vst.msk [vmem:[%s2168_s23 + $0x38] sm:$0xff] %vm859_vm0, %v1564_v7  ;;  %v623_v11 = vpop.f32.mrb[7].mxu0  ;;  %899 = vst.msk [vmem:[%s2168_s23 + $0x138] sm:$0xff] %vm859_vm0, %v2219_v8  ;;  %v2226_v12 = vpop.f32.mrb[7].mxu1  ;;  %v1066_v20 = vmul.f32 %v1564_v7, %v1564_v7  ;;  %v1134_v24 = vsel %vm859_vm0, %v1065_v13, 0.0 }
 0x157   : > { %v1130_v14 = vsel %vm859_vm0, %v1063_v6, 0.0  ;;  %865 = vst.msk [vmem:[%s2168_s23 + $0x28] sm:$0xff] %vm859_vm0, %v623_v11  ;;  %v933_v15 = vsel %vm859_vm0, %v623_v11, 0.0  ;;  %v1064_v16 = vmul.f32 %v623_v11, %v623_v11  ;;  %897 = vst.msk [vmem:[%s2168_s23 + $0x128] sm:$0xff] %vm859_vm0, %v2226_v12  ;;  %v937_v25 = vsel %vm859_vm0, %v1564_v7, 0.0 }
 0x158   : > { %v1131_v17 = vadd.f32 %v1130_v14, %v1129_v10  ;;  %v934_v18 = vadd.f32 %v933_v15, %v932_v9  ;;  %v1136_v32 = vsel %vm859_vm0, %v1066_v20, 0.0 }
 0x159   : > { %v1132_v21 = vsel %vm859_vm0, %v1064_v16, 0.0 }
 0x15a   : > { %v936_v22 = vadd.f32 %v935_v19, %v934_v18  ;;  %v1133_v23 = vadd.f32 %v1132_v21, %v1131_v17 }
 0x15b   : > { %v1567_v26 = vpop.f32.mrb[8].mxu0  ;;  %v2239_v27 = vpop.f32.mrb[8].mxu1 }
 0x15c   : > { %v1135_v28 = vadd.f32 %v1134_v24, %v1133_v23  ;;  %870 = vst.msk [vmem:[%s2168_s23 + $0x50] sm:$0xff] %vm859_vm0, %v1567_v26  ;;  %v636_v29 = vpop.f32.mrb[9].mxu0  ;;  %v938_v30 = vadd.f32 %v937_v25, %v936_v22  ;;  %902 = vst.msk [vmem:[%s2168_s23 + $0x150] sm:$0xff] %vm859_vm0, %v2239_v27  ;;  %v2246_v31 = vpop.f32.mrb[9].mxu1  ;;  %v1069_v42 = vmul.f32 %v1567_v26, %v1567_v26  ;;  %v943_v51 = vsel %vm859_vm0, %v1567_v26, 0.0 }
 0x15d   : > { %868 = vst.msk [vmem:[%s2168_s23 + $0x40] sm:$0xff] %vm859_vm0, %v636_v29  ;;  %v939_v33 = vsel %vm859_vm0, %v636_v29, 0.0  ;;  %v1067_v34 = vmul.f32 %v636_v29, %v636_v29  ;;  %v1568_v35 = vpop.f32.mrb[10].mxu0  ;;  %900 = vst.msk [vmem:[%s2168_s23 + $0x140] sm:$0xff] %vm859_vm0, %v2246_v31  ;;  %v2255_v36 = vpop.f32.mrb[10].mxu1 }
 0x15e   : > { %v940_v37 = vadd.f32 %v939_v33, %v938_v30  ;;  %v1137_v38 = vadd.f32 %v1136_v32, %v1135_v28  ;;  %871 = vst.msk [vmem:[%s2168_s23 + $0x58] sm:$0xff] %vm859_vm0, %v1568_v35  ;;  %v639_v39 = vpop.f32.mrb[11].mxu0  ;;  %903 = vst.msk [vmem:[%s2168_s23 + $0x158] sm:$0xff] %vm859_vm0, %v2255_v36  ;;  %v2262_v40 = vpop.f32.mrb[11].mxu1  ;;  %v1070_v52 = vmul.f32 %v1568_v35, %v1568_v35  ;;  %v1142_v56 = vsel %vm859_vm0, %v1069_v42, 0.0 }
 0x15f   : > { %v1138_v44 = vsel %vm859_vm0, %v1067_v34, 0.0  ;;  %869 = vst.msk [vmem:[%s2168_s23 + $0x48] sm:$0xff] %vm859_vm0, %v639_v39  ;;  %v941_v45 = vsel %vm859_vm0, %v639_v39, 0.0  ;;  %v1068_v47 = vmul.f32 %v639_v39, %v639_v39  ;;  %901 = vst.msk [vmem:[%s2168_s23 + $0x148] sm:$0xff] %vm859_vm0, %v2262_v40  ;;  %v945_v57 = vsel %vm859_vm0, %v1568_v35, 0.0 }
 0x160   : > { %v1139_v49 = vadd.f32 %v1138_v44, %v1137_v38  ;;  %v942_v50 = vadd.f32 %v941_v45, %v940_v37  ;;  %v1144_v1 = vsel %vm859_vm0, %v1070_v52, 0.0 }
 0x161   : > { %v1140_v53 = vsel %vm859_vm0, %v1068_v47, 0.0 }
 0x162   : > { %v944_v54 = vadd.f32 %v943_v51, %v942_v50  ;;  %v1141_v55 = vadd.f32 %v1140_v53, %v1139_v49 }
 0x163   : > { %v1571_v58 = vpop.f32.mrb[12].mxu0  ;;  %v2275_v59 = vpop.f32.mrb[12].mxu1 }
 0x164   : > { %v1143_v60 = vadd.f32 %v1142_v56, %v1141_v55  ;;  %874 = vst.msk [vmem:[%s2168_s23 + $0x70] sm:$0xff] %vm859_vm0, %v1571_v58  ;;  %v652_v61 = vpop.f32.mrb[13].mxu0  ;;  %v946_v62 = vadd.f32 %v945_v57, %v944_v54  ;;  %906 = vst.msk [vmem:[%s2168_s23 + $0x170] sm:$0xff] %vm859_vm0, %v2275_v59  ;;  %v2282_v0 = vpop.f32.mrb[13].mxu1  ;;  %v1073_v13 = vmul.f32 %v1571_v58, %v1571_v58  ;;  %v951_v19 = vsel %vm859_vm0, %v1571_v58, 0.0 }
 0x165   : > { %872 = vst.msk [vmem:[%s2168_s23 + $0x60] sm:$0xff] %vm859_vm0, %v652_v61  ;;  %v947_v2 = vsel %vm859_vm0, %v652_v61, 0.0  ;;  %v1071_v4 = vmul.f32 %v652_v61, %v652_v61  ;;  %v1572_v5 = vpop.f32.mrb[14].mxu0  ;;  %904 = vst.msk [vmem:[%s2168_s23 + $0x160] sm:$0xff] %vm859_vm0, %v2282_v0  ;;  %v2291_v6 = vpop.f32.mrb[14].mxu1 }
 0x166   : > { %v948_v7 = vadd.f32 %v947_v2, %v946_v62  ;;  %v1145_v9 = vadd.f32 %v1144_v1, %v1143_v60  ;;  %875 = vst.msk [vmem:[%s2168_s23 + $0x78] sm:$0xff] %vm859_vm0, %v1572_v5  ;;  %v655_v10 = vpop.f32.mrb[15].mxu0  ;;  %907 = vst.msk [vmem:[%s2168_s23 + $0x178] sm:$0xff] %vm859_vm0, %v2291_v6  ;;  %v2298_v11 = vpop.f32.mrb[15].mxu1  ;;  %v1074_v20 = vmul.f32 %v1572_v5, %v1572_v5  ;;  %v1150_v24 = vsel %vm859_vm0, %v1073_v13, 0.0 }
 0x167   : > { %v1146_v14 = vsel %vm859_vm0, %v1071_v4, 0.0  ;;  %873 = vst.msk [vmem:[%s2168_s23 + $0x68] sm:$0xff] %vm859_vm0, %v655_v10  ;;  %v949_v15 = vsel %vm859_vm0, %v655_v10, 0.0  ;;  %v1072_v16 = vmul.f32 %v655_v10, %v655_v10  ;;  %905 = vst.msk [vmem:[%s2168_s23 + $0x168] sm:$0xff] %vm859_vm0, %v2298_v11  ;;  %v953_v25 = vsel %vm859_vm0, %v1572_v5, 0.0 }
 0x168   : > { %v1147_v17 = vadd.f32 %v1146_v14, %v1145_v9  ;;  %v950_v18 = vadd.f32 %v949_v15, %v948_v7  ;;  %v1152_v34 = vsel %vm859_vm0, %v1074_v20, 0.0 }
 0x169   : > { %v1148_v21 = vsel %vm859_vm0, %v1072_v16, 0.0 }
 0x16a   : > { %v952_v22 = vadd.f32 %v951_v19, %v950_v18  ;;  %v1149_v23 = vadd.f32 %v1148_v21, %v1147_v17 }
 0x16b   : > { %v1575_v26 = vpop.f32.mrb[16].mxu0  ;;  %v2311_v28 = vpop.f32.mrb[16].mxu1 }
 0x16c   : > { %v1151_v29 = vadd.f32 %v1150_v24, %v1149_v23  ;;  %878 = vst.msk [vmem:[%s2168_s23 + $0x90] sm:$0xff] %vm859_vm0, %v1575_v26  ;;  %v668_v30 = vpop.f32.mrb[17].mxu0  ;;  %v954_v32 = vadd.f32 %v953_v25, %v952_v22  ;;  %910 = vst.msk [vmem:[%s2168_s23 + $0x190] sm:$0xff] %vm859_vm0, %v2311_v28  ;;  %v2318_v33 = vpop.f32.mrb[17].mxu1  ;;  %v1077_v49 = vmul.f32 %v1575_v26, %v1575_v26  ;;  %v959_v55 = vsel %vm859_vm0, %v1575_v26, 0.0 }
 0x16d   : > { %876 = vst.msk [vmem:[%s2168_s23 + $0x80] sm:$0xff] %vm859_vm0, %v668_v30  ;;  %v955_v35 = vsel %vm859_vm0, %v668_v30, 0.0  ;;  %v1075_v37 = vmul.f32 %v668_v30, %v668_v30  ;;  %v1576_v38 = vpop.f32.mrb[18].mxu0  ;;  %908 = vst.msk [vmem:[%s2168_s23 + $0x180] sm:$0xff] %vm859_vm0, %v2318_v33  ;;  %v2327_v39 = vpop.f32.mrb[18].mxu1 }
 0x16e   : > { %v956_v42 = vadd.f32 %v955_v35, %v954_v32  ;;  %v1153_v44 = vadd.f32 %v1152_v34, %v1151_v29  ;;  %879 = vst.msk [vmem:[%s2168_s23 + $0x98] sm:$0xff] %vm859_vm0, %v1576_v38  ;;  %v671_v45 = vpop.f32.mrb[19].mxu0  ;;  %911 = vst.msk [vmem:[%s2168_s23 + $0x198] sm:$0xff] %vm859_vm0, %v2327_v39  ;;  %v2334_v47 = vpop.f32.mrb[19].mxu1  ;;  %v1078_v56 = vmul.f32 %v1576_v38, %v1576_v38  ;;  %v1158_v61 = vsel %vm859_vm0, %v1077_v49, 0.0 }
 0x16f   : > { %v1154_v50 = vsel %vm859_vm0, %v1075_v37, 0.0  ;;  %877 = vst.msk [vmem:[%s2168_s23 + $0x88] sm:$0xff] %vm859_vm0, %v671_v45  ;;  %v957_v51 = vsel %vm859_vm0, %v671_v45, 0.0  ;;  %v1076_v52 = vmul.f32 %v671_v45, %v671_v45  ;;  %909 = vst.msk [vmem:[%s2168_s23 + $0x188] sm:$0xff] %vm859_vm0, %v2334_v47  ;;  %v961_v62 = vsel %vm859_vm0, %v1576_v38, 0.0 }
 0x170   : > { %v1155_v53 = vadd.f32 %v1154_v50, %v1153_v44  ;;  %v958_v54 = vadd.f32 %v957_v51, %v956_v42  ;;  %v1160_v10 = vsel %vm859_vm0, %v1078_v56, 0.0 }
 0x171   : > { %v1156_v57 = vsel %vm859_vm0, %v1076_v52, 0.0 }
 0x172   : > { %v960_v58 = vadd.f32 %v959_v55, %v958_v54  ;;  %v1157_v60 = vadd.f32 %v1156_v57, %v1155_v53 }
 0x173   : > { %v1579_v1 = vpop.f32.mrb[20].mxu0  ;;  %v2347_v2 = vpop.f32.mrb[20].mxu1 }
 0x174   : > { %v1159_v4 = vadd.f32 %v1158_v61, %v1157_v60  ;;  %882 = vst.msk [vmem:[%s2168_s23 + $0xb0] sm:$0xff] %vm859_vm0, %v1579_v1  ;;  %v684_v5 = vpop.f32.mrb[21].mxu0  ;;  %v962_v7 = vadd.f32 %v961_v62, %v960_v58  ;;  %914 = vst.msk [vmem:[%s2168_s23 + $0x1b0] sm:$0xff] %vm859_vm0, %v2347_v2  ;;  %v2354_v9 = vpop.f32.mrb[21].mxu1  ;;  %v1081_v21 = vmul.f32 %v1579_v1, %v1579_v1  ;;  %v967_v29 = vsel %vm859_vm0, %v1579_v1, 0.0 }
 0x175   : > { %880 = vst.msk [vmem:[%s2168_s23 + $0xa0] sm:$0xff] %vm859_vm0, %v684_v5  ;;  %v963_v13 = vsel %vm859_vm0, %v684_v5, 0.0  ;;  %v1079_v14 = vmul.f32 %v684_v5, %v684_v5  ;;  %v1580_v15 = vpop.f32.mrb[22].mxu0  ;;  %912 = vst.msk [vmem:[%s2168_s23 + $0x1a0] sm:$0xff] %vm859_vm0, %v2354_v9  ;;  %v2363_v16 = vpop.f32.mrb[22].mxu1 }
 0x176   : > { %v964_v17 = vadd.f32 %v963_v13, %v962_v7  ;;  %v1161_v18 = vadd.f32 %v1160_v10, %v1159_v4  ;;  %883 = vst.msk [vmem:[%s2168_s23 + $0xb8] sm:$0xff] %vm859_vm0, %v1580_v15  ;;  %v687_v19 = vpop.f32.mrb[23].mxu0  ;;  %915 = vst.msk [vmem:[%s2168_s23 + $0x1b8] sm:$0xff] %vm859_vm0, %v2363_v16  ;;  %v2370_v20 = vpop.f32.mrb[23].mxu1  ;;  %v1082_v30 = vmul.f32 %v1580_v15, %v1580_v15  ;;  %v1166_v37 = vsel %vm859_vm0, %v1081_v21, 0.0 }
 0x177   : > { %v1162_v22 = vsel %vm859_vm0, %v1079_v14, 0.0  ;;  %881 = vst.msk [vmem:[%s2168_s23 + $0xa8] sm:$0xff] %vm859_vm0, %v687_v19  ;;  %v965_v23 = vsel %vm859_vm0, %v687_v19, 0.0  ;;  %v1080_v24 = vmul.f32 %v687_v19, %v687_v19  ;;  %913 = vst.msk [vmem:[%s2168_s23 + $0x1a8] sm:$0xff] %vm859_vm0, %v2370_v20  ;;  %v969_v38 = vsel %vm859_vm0, %v1580_v15, 0.0 }
 0x178   : > { %v1163_v25 = vadd.f32 %v1162_v22, %v1161_v18  ;;  %v966_v26 = vadd.f32 %v965_v23, %v964_v17  ;;  %v1168_v52 = vsel %vm859_vm0, %v1082_v30, 0.0 }
 0x179   : > { %v1164_v32 = vsel %vm859_vm0, %v1080_v24, 0.0 }
 0x17a   : > { %v968_v34 = vadd.f32 %v967_v29, %v966_v26  ;;  %v1165_v35 = vadd.f32 %v1164_v32, %v1163_v25 }
 0x17b   : > { %v1583_v42 = vpop.f32.mrb[24].mxu0  ;;  %v2383_v44 = vpop.f32.mrb[24].mxu1 }
 0x17c   : > { %v1167_v45 = vadd.f32 %v1166_v37, %v1165_v35  ;;  %886 = vst.msk [vmem:[%s2168_s23 + $0xd0] sm:$0xff] %vm859_vm0, %v1583_v42  ;;  %v700_v49 = vpop.f32.mrb[25].mxu0  ;;  %v970_v50 = vadd.f32 %v969_v38, %v968_v34  ;;  %918 = vst.msk [vmem:[%s2168_s23 + $0x1d0] sm:$0xff] %vm859_vm0, %v2383_v44  ;;  %v2390_v51 = vpop.f32.mrb[25].mxu1  ;;  %v1085_v62 = vmul.f32 %v1583_v42, %v1583_v42  ;;  %v975_v13 = vsel %vm859_vm0, %v1583_v42, 0.0 }
 0x17d   : > { %884 = vst.msk [vmem:[%s2168_s23 + $0xc0] sm:$0xff] %vm859_vm0, %v700_v49  ;;  %v971_v53 = vsel %vm859_vm0, %v700_v49, 0.0  ;;  %v1083_v54 = vmul.f32 %v700_v49, %v700_v49  ;;  %v1584_v55 = vpop.f32.mrb[26].mxu0  ;;  %916 = vst.msk [vmem:[%s2168_s23 + $0x1c0] sm:$0xff] %vm859_vm0, %v2390_v51  ;;  %v2399_v56 = vpop.f32.mrb[26].mxu1 }
 0x17e   : > { %v972_v57 = vadd.f32 %v971_v53, %v970_v50  ;;  %v1169_v58 = vadd.f32 %v1168_v52, %v1167_v45  ;;  %887 = vst.msk [vmem:[%s2168_s23 + $0xd8] sm:$0xff] %vm859_vm0, %v1584_v55  ;;  %v703_v60 = vpop.f32.mrb[27].mxu0  ;;  %919 = vst.msk [vmem:[%s2168_s23 + $0x1d8] sm:$0xff] %vm859_vm0, %v2399_v56  ;;  %v2406_v61 = vpop.f32.mrb[27].mxu1  ;;  %v1086_v14 = vmul.f32 %v1584_v55, %v1584_v55  ;;  %v1174_v19 = vsel %vm859_vm0, %v1085_v62, 0.0 }
 0x17f   : > { %v1170_v1 = vsel %vm859_vm0, %v1083_v54, 0.0  ;;  %885 = vst.msk [vmem:[%s2168_s23 + $0xc8] sm:$0xff] %vm859_vm0, %v703_v60  ;;  %v973_v4 = vsel %vm859_vm0, %v703_v60, 0.0  ;;  %v1084_v5 = vmul.f32 %v703_v60, %v703_v60  ;;  %917 = vst.msk [vmem:[%s2168_s23 + $0x1c8] sm:$0xff] %vm859_vm0, %v2406_v61  ;;  %v977_v21 = vsel %vm859_vm0, %v1584_v55, 0.0 }
 0x180   : > { %v1171_v7 = vadd.f32 %v1170_v1, %v1169_v58  ;;  %v974_v10 = vadd.f32 %v973_v4, %v972_v57  ;;  %v1176_v30 = vsel %vm859_vm0, %v1086_v14, 0.0 }
 0x181   : > { %v1172_v15 = vsel %vm859_vm0, %v1084_v5, 0.0 }
 0x182   : > { %v976_v17 = vadd.f32 %v975_v13, %v974_v10  ;;  %v1173_v18 = vadd.f32 %v1172_v15, %v1171_v7 }
 0x183   : > { %v1587_v22 = vpop.f32.mrb[28].mxu0  ;;  %v2421_v23 = vpop.f32.mrb[28].mxu1 }
 0x184   : > { %v1175_v24 = vadd.f32 %v1174_v19, %v1173_v18  ;;  %890 = vst.msk [vmem:[%s2168_s23 + $0xf0] sm:$0xff] %vm859_vm0, %v1587_v22  ;;  %v716_v25 = vpop.f32.mrb[29].mxu0  ;;  %v978_v26 = vadd.f32 %v977_v21, %v976_v17  ;;  %922 = vst.msk [vmem:[%s2168_s23 + $0x1f0] sm:$0xff] %vm859_vm0, %v2421_v23  ;;  %v2428_v29 = vpop.f32.mrb[29].mxu1  ;;  %v1089_v50 = vmul.f32 %v1587_v22, %v1587_v22 }
 0x185   : > { %888 = vst.msk [vmem:[%s2168_s23 + $0xe0] sm:$0xff] %vm859_vm0, %v716_v25  ;;  %v979_v32 = vsel %vm859_vm0, %v716_v25, 0.0  ;;  %v1087_v34 = vmul.f32 %v716_v25, %v716_v25  ;;  %v1588_v35 = vpop.f32.mrb[30].mxu0  ;;  %920 = vst.msk [vmem:[%s2168_s23 + $0x1e0] sm:$0xff] %vm859_vm0, %v2428_v29  ;;  %v2444_v37 = vpop.f32.mrb[30].mxu1 }
 0x186   : > { %v980_v38 = vadd.f32 %v979_v32, %v978_v26  ;;  %v1177_v42 = vadd.f32 %v1176_v30, %v1175_v24  ;;  %891 = vst.msk [vmem:[%s2168_s23 + $0xf8] sm:$0xff] %vm859_vm0, %v1588_v35  ;;  %v719_v45 = vpop.f32.mrb[31].mxu0  ;;  %923 = vst.msk [vmem:[%s2168_s23 + $0x1f8] sm:$0xff] %vm859_vm0, %v2444_v37  ;;  %v2451_v49 = vpop.f32.mrb[31].mxu1 }
 0x187   : > { %v1178_v52 = vsel %vm859_vm0, %v1087_v34, 0.0  ;;  %889 = vst.msk [vmem:[%s2168_s23 + $0xe8] sm:$0xff] %vm859_vm0, %v719_v45  ;;  %v981_v53 = vsel %vm859_vm0, %v719_v45, 0.0  ;;  %v1088_v54 = vmul.f32 %v719_v45, %v719_v45  ;;  %921 = vst.msk [vmem:[%s2168_s23 + $0x1e8] sm:$0xff] %vm859_vm0, %v2451_v49 }
 0x188   : > { %v1179_v55 = vadd.f32 %v1178_v52, %v1177_v42  ;;  %v982_v57 = vadd.f32 %v981_v53, %v980_v38 }
 0x189   : > { %1819 = shalt.err (!%p1816_p7)
}
 0x18a   : > { %s1820_s7 = scalar_lea.hbm %s2433_s29, 8192  ;;  %s1824_s21 = scalar_lea.hbm %s2741_s2, 16384 }
 0x18b   : > { %p1821_p9 = scmp.ne.s32.totalorder %s2433_s29, %s1820_s7  ;;  %p1825_p5 = scmp.lt.u32.totalorder %s2433_s29, %s2741_s2 }
 0x18c   : > { %p1826_p11 = scmp.lt.u32.totalorder %s1824_s21, %s1820_s7  ;;  %p1828_p4 = scmp.lt.u32.totalorder %s1820_s7, %s2433_s29 }
 0x18d   : > { %p1822_p1 = pnand %p1821_p9, %p2068_p12 }
 0x18e   : > { %p1827_p2 = por %p1826_p11, %p1825_p5 }
 0x18f   : > { %p1823_p0 = pneg %p1822_p1 }
 0x190   : > { %p1829_p6 = por %p1828_p4, %p1827_p2 }
 0x192   : > { %p1830_p8 = pnand %p1829_p6, %p1823_p0 }
 0x194   : > { %1833 = shalt.err (!%p1830_p8)
}
 0x195   : > { %s1943_s10 = smov 128   ;;  %s1944_s28 = smov 8   ;;  %v983_v58 = vsel %vm859_vm0, %v1587_v22, 0.0  ;;  %v1090_v60 = vmul.f32 %v1588_v35, %v1588_v35  ;;  %v1180_v62 = vsel %vm859_vm0, %v1088_v54, 0.0  ;;  %v1091_v1 = vmul.f32 %v2175_v43, %v2175_v43 }
 0x196   : > { %1643 = dma.vmem_to_hbm [thread:$0]  (%p2068_p12), %s2435_s13, 8192, %s2433_s29, %s1258_s11, %s1943_s10, %s1943_s10, %s1944_s28   ;;  %v984_v4 = vadd.f32 %v983_v58, %v982_v57  ;;  %v1181_v5 = vadd.f32 %v1180_v62, %v1179_v55  ;;  %v1182_v7 = vsel %vm859_vm0, %v1089_v50, 0.0  ;;  %v985_v10 = vsel %vm859_vm0, %v1588_v35, 0.0 }
 0x197   : > { %v987_v13 = vsel %vm859_vm0, %v2175_v43, 0.0  ;;  %v1184_v17 = vsel %vm859_vm0, %v1090_v60, 0.0  ;;  %v1186_v18 = vsel %vm859_vm0, %v1091_v1, 0.0  ;;  %v1092_v19 = vmul.f32 %v2189_v48, %v2189_v48  ;;  %s1262_s13 = sand.u32 1, %s1993_s19   ;;  %s1495_s29 = sshll.u32 %s1993_s19, 4 }
 0x198   : > { %v1183_v14 = vadd.f32 %v1182_v7, %v1181_v5  ;;  %v986_v15 = vadd.f32 %v985_v10, %v984_v4  ;;  %v1093_v24 = vmul.f32 %v2166_v41, %v2166_v41  ;;  %v989_v25 = vsel %vm859_vm0, %v2189_v48, 0.0  ;;  %s240_s11 = scalar_lea.vmem [#allocation8], %s2119_s14  ;;  %s246_s25 = scalar_lea.vmem [#allocation10], %s2119_s14 }
 0x199   : > { %v991_v43 = vsel %vm859_vm0, %v2166_v41, 0.0  ;;  %v1094_v32 = vmul.f32 %v2182_v46, %v2182_v46  ;;  %v1188_v34 = vsel %vm859_vm0, %v1092_v19, 0.0  ;;  %v1095_v35 = vmul.f32 %v2210_v3, %v2210_v3  ;;  %s1295_s26 = sshll.u32 %s240_s11, 4  ;;  %s1308_s24 = sshll.u32 %s246_s25, 4  ;;  %s2660_s26 = int_to_ptr.vmem [resolvable:$true] %s1295_s26  ;;  %s2668_s24 = int_to_ptr.vmem [resolvable:$true] %s1308_s24 }
 0x19a   : > { %v988_v21 = vadd.f32 %v987_v13, %v986_v15  ;;  %v1185_v22 = vadd.f32 %v1184_v17, %v1183_v14  ;;  %v1190_v45 = vsel %vm859_vm0, %v1093_v24, 0.0  ;;  %v993_v48 = vsel %vm859_vm0, %v2182_v46, 0.0  ;;  %s2658_s8 = scalar_lea.hbm %s2742_s3, %s1495_s29  ;;  %s2666_s21 = scalar_lea.hbm %s2743_s4, %s1495_s29 }
 0x19b   : > { %v995_v50 = vsel %vm859_vm0, %v2210_v3, 0.0  ;;  %v1192_v53 = vsel %vm859_vm0, %v1094_v32, 0.0  ;;  %v1194_v54 = vsel %vm859_vm0, %v1095_v35, 0.0  ;;  %v1096_v55 = vmul.f32 %v2226_v12, %v2226_v12  ;;  %s2670_s23 = scalar_lea.sflag [#allocation9], %s1262_s13  ;;  %s1834_s12 = scalar_lea.vmem %s2660_s26, 16 }
 0x19c   : > { %v1187_v26 = vadd.f32 %v1186_v18, %v1185_v22  ;;  %v990_v30 = vadd.f32 %v989_v25, %v988_v21  ;;  %v1097_v60 = vmul.f32 %v2203_v63, %v2203_v63  ;;  %v997_v46 = vsel %vm859_vm0, %v2226_v12, 0.0  ;;  %p1835_p10 = scmp.ne.s32.totalorder %s2660_s26, %s1834_s12  ;;  %s1945_s10 = smov [#allocation8]  }
 0x19d   : > { %v999_v3 = vsel %vm859_vm0, %v2203_v63, 0.0  ;;  %v1098_v4 = vmul.f32 %v2219_v8, %v2219_v8  ;;  %v1196_v5 = vsel %vm859_vm0, %v1096_v55, 0.0  ;;  %v1099_v7 = vmul.f32 %v2246_v31, %v2246_v31  ;;  %s1838_s28 = sshll.u32 %s1945_s10, 4  ;;  %s1839_s28 = int_to_ptr.vmem [resolvable:$false] %s1838_s28 }
 0x19e   : > { %v992_v38 = vadd.f32 %v991_v43, %v990_v30  ;;  %v1189_v42 = vadd.f32 %v1188_v34, %v1187_v26  ;;  %v1198_v14 = vsel %vm859_vm0, %v1097_v60, 0.0  ;;  %v1001_v12 = vsel %vm859_vm0, %v2219_v8, 0.0  ;;  %p1836_p13 = pnand %p1835_p10, %p2068_p12  ;;  %s1840_s6 = scalar_lea.vmem %s1839_s28, 32 }
 0x19f   : > { %v1003_v15 = vsel %vm859_vm0, %v2246_v31, 0.0  ;;  %v1200_v18 = vsel %vm859_vm0, %v1098_v4, 0.0  ;;  %v1202_v19 = vsel %vm859_vm0, %v1099_v7, 0.0  ;;  %v1100_v21 = vmul.f32 %v2262_v40, %v2262_v40  ;;  %p1841_p7 = scmp.lt.s32.totalorder %s2660_s26, %s1839_s28  ;;  %p1842_p9 = scmp.lt.s32.totalorder %s1840_s6, %s1834_s12 }
 0x1a0   : > { %v1191_v52 = vadd.f32 %v1190_v45, %v1189_v42  ;;  %v994_v41 = vadd.f32 %v993_v48, %v992_v38  ;;  %v1101_v25 = vmul.f32 %v2239_v27, %v2239_v27  ;;  %v1005_v8 = vsel %vm859_vm0, %v2262_v40, 0.0  ;;  %p1837_p3 = pneg %p1836_p13 }
 0x1a1   : > { %v1007_v31 = vsel %vm859_vm0, %v2239_v27, 0.0  ;;  %v1102_v43 = vmul.f32 %v2255_v36, %v2255_v36  ;;  %v1204_v32 = vsel %vm859_vm0, %v1100_v21, 0.0  ;;  %v1103_v34 = vmul.f32 %v2282_v0, %v2282_v0  ;;  %p1843_p1 = por %p1842_p9, %p1841_p7 }
 0x1a2   : > { %v996_v57 = vadd.f32 %v995_v50, %v994_v41  ;;  %v1193_v58 = vadd.f32 %v1192_v53, %v1191_v52  ;;  %v1206_v42 = vsel %vm859_vm0, %v1101_v25, 0.0  ;;  %v1009_v40 = vsel %vm859_vm0, %v2255_v36, 0.0 }
 0x1a3   : > { %v1011_v45 = vsel %vm859_vm0, %v2282_v0, 0.0  ;;  %v1208_v50 = vsel %vm859_vm0, %v1102_v43, 0.0  ;;  %v1210_v52 = vsel %vm859_vm0, %v1103_v34, 0.0  ;;  %v1104_v41 = vmul.f32 %v2298_v11, %v2298_v11  ;;  %p1844_p0 = pnand %p1843_p1, %p1837_p3 }
 0x1a4   : > { %v1195_v62 = vadd.f32 %v1194_v54, %v1193_v58  ;;  %v998_v1 = vadd.f32 %v997_v46, %v996_v57  ;;  %v1105_v55 = vmul.f32 %v2275_v59, %v2275_v59  ;;  %v1013_v36 = vsel %vm859_vm0, %v2298_v11, 0.0 }
 0x1a5   : > { %v1015_v0 = vsel %vm859_vm0, %v2275_v59, 0.0  ;;  %v1106_v60 = vmul.f32 %v2291_v6, %v2291_v6  ;;  %v1212_v46 = vsel %vm859_vm0, %v1104_v41, 0.0  ;;  %v1017_v11 = vsel %vm859_vm0, %v2291_v6, 0.0 }
 0x1a6   : > { %v1000_v10 = vadd.f32 %v999_v3, %v998_v1  ;;  %v1197_v13 = vadd.f32 %v1196_v5, %v1195_v62  ;;  %v1107_v62 = vmul.f32 %v2318_v33, %v2318_v33  ;;  %v1214_v4 = vsel %vm859_vm0, %v1105_v55, 0.0 }
 0x1a7   : > { %v1019_v5 = vsel %vm859_vm0, %v2318_v33, 0.0  ;;  %v1021_v6 = vsel %vm859_vm0, %v2334_v47, 0.0  ;;  %v1023_v33 = vsel %vm859_vm0, %v2311_v28, 0.0  ;;  %vm1057_vm1 = vcmask 57344  }
 0x1a8   : > { %v1199_v17 = vadd.f32 %v1198_v14, %v1197_v13  ;;  %v1002_v63 = vadd.f32 %v1001_v12, %v1000_v10  ;;  %v1216_v10 = vsel %vm859_vm0, %v1106_v60, 0.0  ;;  %v1218_v13 = vsel %vm859_vm0, %v1107_v62, 0.0 }
 0x1a9   : > { %v1108_v14 = vmul.f32 %v2334_v47, %v2334_v47  ;;  %v1025_v47 = vsel %vm859_vm0, %v2327_v39, 0.0  ;;  %v1117_v60 = vmul.f32 %v2383_v44, %v2383_v44 }
 0x1aa   : > { %v1004_v22 = vadd.f32 %v1003_v15, %v1002_v63  ;;  %v1201_v24 = vadd.f32 %v1200_v18, %v1199_v17  ;;  %v1109_v17 = vmul.f32 %v2311_v28, %v2311_v28 }
 0x1ab   : > { %v1220_v21 = vsel %vm859_vm0, %v1108_v14, 0.0 }
 0x1ac   : > { %v1203_v26 = vadd.f32 %v1202_v19, %v1201_v24  ;;  %v1006_v30 = vadd.f32 %v1005_v8, %v1004_v22  ;;  %v1110_v19 = vmul.f32 %v2327_v39, %v2327_v39  ;;  %v1111_v22 = vmul.f32 %v2354_v9, %v2354_v9 }
 0x1ad   : > { %v1222_v8 = vsel %vm859_vm0, %v1109_v17, 0.0  ;;  %v1029_v39 = vsel %vm859_vm0, %v2370_v20, 0.0 }
 0x1ae   : > { %v1008_v35 = vadd.f32 %v1007_v31, %v1006_v30  ;;  %v1205_v38 = vadd.f32 %v1204_v32, %v1203_v26  ;;  %v1027_v26 = vsel %vm859_vm0, %v2354_v9, 0.0  ;;  %v1224_v31 = vsel %vm859_vm0, %v1110_v19, 0.0 }
 0x1af   : > { %v1226_v43 = vsel %vm859_vm0, %v1111_v22, 0.0  ;;  %v1112_v32 = vmul.f32 %v2370_v20, %v2370_v20  ;;  %v1031_v9 = vsel %vm859_vm0, %v2347_v2, 0.0  ;;  %v1033_v20 = vsel %vm859_vm0, %v2363_v16, 0.0 }
 0x1b0   : > { %v1207_v48 = vadd.f32 %v1206_v42, %v1205_v38  ;;  %v1010_v27 = vadd.f32 %v1009_v40, %v1008_v35  ;;  %v1113_v38 = vmul.f32 %v2347_v2, %v2347_v2 }
 0x1b2   : > { %v1012_v53 = vadd.f32 %v1011_v45, %v1010_v27  ;;  %v1209_v54 = vadd.f32 %v1208_v50, %v1207_v48  ;;  %v1114_v45 = vmul.f32 %v2363_v16, %v2363_v16  ;;  %v1228_v48 = vsel %vm859_vm0, %v1112_v32, 0.0 }
 0x1b3   : > { %v1115_v27 = vmul.f32 %v2390_v51, %v2390_v51  ;;  %v1230_v41 = vsel %vm859_vm0, %v1113_v38, 0.0  ;;  %v1037_v16 = vsel %vm859_vm0, %v2406_v61, 0.0 }
 0x1b4   : > { %v1211_v57 = vadd.f32 %v1210_v52, %v1209_v54  ;;  %v1014_v58 = vadd.f32 %v1013_v36, %v1012_v53  ;;  %v1035_v53 = vsel %vm859_vm0, %v2390_v51, 0.0  ;;  %v1232_v55 = vsel %vm859_vm0, %v1114_v45, 0.0 }
 0x1b5   : > { %v1234_v36 = vsel %vm859_vm0, %v1115_v27, 0.0  ;;  %v1039_v51 = vsel %vm859_vm0, %v2383_v44, 0.0 }
 0x1b6   : > { %v1016_v1 = vadd.f32 %v1015_v0, %v1014_v58  ;;  %v1213_v3 = vadd.f32 %v1212_v46, %v1211_v57  ;;  %v1116_v57 = vmul.f32 %v2406_v61, %v2406_v61  ;;  %v1041_v61 = vsel %vm859_vm0, %v2399_v56, 0.0 }
 0x1b8   : > { %v1215_v7 = vadd.f32 %v1214_v4, %v1213_v3  ;;  %v1018_v59 = vadd.f32 %v1017_v11, %v1016_v1  ;;  %v1118_v1 = vmul.f32 %v2399_v56, %v2399_v56  ;;  %v1236_v3 = vsel %vm859_vm0, %v1116_v57, 0.0 }
 0x1b9   : > { %v1119_v4 = vmul.f32 %v2428_v29, %v2428_v29  ;;  %v1045_v56 = vsel %vm859_vm0, %v2451_v49, 0.0 }
 0x1ba   : > { %v1020_v12 = vadd.f32 %v1019_v5, %v1018_v59  ;;  %v1217_v15 = vadd.f32 %v1216_v10, %v1215_v7  ;;  %v1238_v7 = vsel %vm859_vm0, %v1117_v60, 0.0  ;;  %v1043_v59 = vsel %vm859_vm0, %v2428_v29, 0.0 }
 0x1bb   : > { %v1242_v14 = vsel %vm859_vm0, %v1119_v4, 0.0  ;;  %v1047_v29 = vsel %vm859_vm0, %v2421_v23, 0.0 }
 0x1bc   : > { %v1219_v63 = vadd.f32 %v1218_v13, %v1217_v15  ;;  %v1022_v18 = vadd.f32 %v1021_v6, %v1020_v12  ;;  %v1240_v13 = vsel %vm859_vm0, %v1118_v1, 0.0  ;;  %v1120_v12 = vmul.f32 %v2451_v49, %v2451_v49 }
 0x1bd   : > { %v1121_v6 = vmul.f32 %v2421_v23, %v2421_v23  ;;  %v1049_v49 = vsel %vm859_vm0, %v2444_v37, 0.0 }
 0x1be   : > { %v1024_v24 = vadd.f32 %v1023_v33, %v1022_v18  ;;  %v1221_v25 = vadd.f32 %v1220_v21, %v1219_v63  ;;  %v1122_v33 = vmul.f32 %v2444_v37, %v2444_v37  ;;  %v1244_v19 = vsel %vm859_vm0, %v1120_v12, 0.0 }
 0x1c0   : > { %v1223_v30 = vadd.f32 %v1222_v8, %v1221_v25  ;;  %v1026_v28 = vadd.f32 %v1025_v47, %v1024_v24  ;;  %v1246_v24 = vsel %vm859_vm0, %v1121_v6, 0.0  ;;  %v1248_v47 = vsel %vm859_vm0, %v1122_v33, 0.0 }
 0x1c2   : > { %v1028_v34 = vadd.f32 %v1027_v26, %v1026_v28  ;;  %v1225_v35 = vadd.f32 %v1224_v31, %v1223_v30 }
 0x1c4   : > { %v1227_v42 = vadd.f32 %v1226_v43, %v1225_v35  ;;  %v1030_v40 = vadd.f32 %v1029_v39, %v1028_v34 }
 0x1c6   : > { %v1032_v50 = vadd.f32 %v1031_v9, %v1030_v40  ;;  %v1229_v52 = vadd.f32 %v1228_v48, %v1227_v42 }
 0x1c8   : > { %v1231_v54 = vadd.f32 %v1230_v41, %v1229_v52  ;;  %v1034_v2 = vadd.f32 %v1033_v20, %v1032_v50 }
 0x1ca   : > { %v1036_v58 = vadd.f32 %v1035_v53, %v1034_v2  ;;  %v1233_v0 = vadd.f32 %v1232_v55, %v1231_v54 }
 0x1cc   : > { %v1235_v46 = vadd.f32 %v1234_v36, %v1233_v0  ;;  %v1038_v62 = vadd.f32 %v1037_v16, %v1036_v58 }
 0x1ce   : > { %v1040_v11 = vadd.f32 %v1039_v51, %v1038_v62  ;;  %v1237_v5 = vadd.f32 %v1236_v3, %v1235_v46 }
 0x1d0   : > { %v1239_v10 = vadd.f32 %v1238_v7, %v1237_v5  ;;  %v1042_v44 = vadd.f32 %v1041_v61, %v1040_v11 }
 0x1d2   : > { %v1044_v15 = vadd.f32 %v1043_v59, %v1042_v44  ;;  %v1241_v17 = vadd.f32 %v1240_v13, %v1239_v10 }
 0x1d4   : > { %v1243_v63 = vadd.f32 %v1242_v14, %v1241_v17  ;;  %v1046_v18 = vadd.f32 %v1045_v56, %v1044_v15 }
 0x1d6   : > { %v1048_v21 = vadd.f32 %v1047_v29, %v1046_v18  ;;  %v1245_v22 = vadd.f32 %v1244_v19, %v1243_v63 }
 0x1d8   : > { %v1050_v25 = vadd.f32 %v1049_v49, %v1048_v21  ;;  %v1247_v8 = vadd.f32 %v1246_v24, %v1245_v22 }
 0x1da   : > { %v1051_v23 = vrot.slane %v1050_v25, 4  ;;  %v1249_v26 = vadd.f32 %v1248_v47, %v1247_v8 }
 0x1dc   : > { %v1052_v30 = vadd.f32 %v1051_v23, %v1050_v25  ;;  %v1250_v28 = vrot.slane %v1249_v26, 4 }
 0x1de   : > { %v1053_v31 = vrot.slane %v1052_v30, 2  ;;  %v1251_v43 = vadd.f32 %v1250_v28, %v1249_v26 }
 0x1e0   : > { %v1054_v32 = vadd.f32 %v1053_v31, %v1052_v30  ;;  %v1252_v34 = vrot.slane %v1251_v43, 2 }
 0x1e2   : > { %v1055_v35 = vrot.slane %v1054_v32, 1  ;;  %v1253_v37 = vadd.f32 %v1252_v34, %v1251_v43 }
 0x1e4   : > { %v1056_v38 = vadd.f32 %v1055_v35, %v1054_v32  ;;  %v1254_v39 = vrot.slane %v1253_v37, 1 }
 0x1e6   : > { %v1255_v42 = vadd.f32 %v1254_v39, %v1253_v37  ;;  %1058 = vst.msk [vmem:[%s240_s11] sm:$0x1] %vm1057_vm1, %v1056_v38 }
 0x1e7   : > { %1847 = shalt.err (!%p1844_p0)
}
 0x1e8   : > { %s1848_s13 = scalar_lea.hbm %s2658_s8, 16  ;;  %s1852_s7 = scalar_lea.hbm %s2742_s3, 32 }
 0x1e9   : > { %p1849_p5 = scmp.ne.s32.totalorder %s2658_s8, %s1848_s13  ;;  %p1853_p4 = scmp.lt.u32.totalorder %s2658_s8, %s2742_s3 }
 0x1ea   : > { %p1854_p6 = scmp.lt.u32.totalorder %s1852_s7, %s1848_s13  ;;  %p1856_p10 = scmp.lt.u32.totalorder %s1848_s13, %s2658_s8 }
 0x1eb   : > { %p1850_p11 = pnand %p1849_p5, %p2068_p12 }
 0x1ec   : > { %p1855_p8 = por %p1854_p6, %p1853_p4 }
 0x1ed   : > { %p1851_p2 = pneg %p1850_p11 }
 0x1ee   : > { %p1857_p13 = por %p1856_p10, %p1855_p8 }
 0x1f0   : > { %p1858_p3 = pnand %p1857_p13, %p1851_p2 }
 0x1f2   : > { %1861 = shalt.err (!%p1858_p3)
}
 0x1f3   : > { %1644 = dma.vmem_to_hbm [thread:$0]  (%p2068_p12), %s2660_s26, 16, %s2658_s8, %s2670_s23   ;;  %1256 = vst.msk [vmem:[%s246_s25] sm:$0x1] %vm1057_vm1, %v1255_v42 }
 0x1f4   : > { %s1862_s12 = scalar_lea.vmem %s2668_s24, 16  ;;  %s1946_s10 = smov [#allocation10]  }
 0x1f5   : > { %p1863_p7 = scmp.ne.s32.totalorder %s2668_s24, %s1862_s12  ;;  %s1866_s28 = sshll.u32 %s1946_s10, 4  ;;  %s1867_s28 = int_to_ptr.vmem [resolvable:$false] %s1866_s28 }
 0x1f6   : > { %s1868_s6 = scalar_lea.vmem %s1867_s28, 32  ;;  %p1869_p0 = scmp.lt.s32.totalorder %s2668_s24, %s1867_s28 }
 0x1f7   : > { %p1864_p9 = pnand %p1863_p7, %p2068_p12  ;;  %p1870_p5 = scmp.lt.s32.totalorder %s1868_s6, %s1862_s12 }
 0x1f9   : > { %p1865_p1 = pneg %p1864_p9  ;;  %p1871_p11 = por %p1870_p5, %p1869_p0 }
 0x1fb   : > { %p1872_p2 = pnand %p1871_p11, %p1865_p1 }
 0x1fd   : > { %1875 = shalt.err (!%p1872_p2)
}
 0x1fe   : > { %s1876_s14 = scalar_lea.hbm %s2666_s21, 16  ;;  %s1880_s8 = scalar_lea.hbm %s2743_s4, 32 }
 0x1ff   : > { %p1877_p4 = scmp.ne.s32.totalorder %s2666_s21, %s1876_s14  ;;  %p1881_p10 = scmp.lt.u32.totalorder %s2666_s21, %s2743_s4 }
 0x200   : > { %p1882_p13 = scmp.lt.u32.totalorder %s1880_s8, %s1876_s14  ;;  %p1884_p7 = scmp.lt.u32.totalorder %s1876_s14, %s2666_s21 }
 0x201   : > { %p1878_p6 = pnand %p1877_p4, %p2068_p12 }
 0x202   : > { %p1883_p3 = por %p1882_p13, %p1881_p10 }
 0x203   : > { %p1879_p8 = pneg %p1878_p6 }
 0x204   : > { %p1885_p9 = por %p1884_p7, %p1883_p3 }
 0x206   : > { %p1886_p1 = pnand %p1885_p9, %p1879_p8 }
 0x208   : > { %1889 = shalt.err (!%p1886_p1)
}
 0x209   : > { %1645 = dma.vmem_to_hbm [thread:$0]  (%p2068_p12), %s2668_s24, 16, %s2666_s21, %s2670_s23  }
 0x20a PF: > { %s1320_s11 = sand.u32 1, %s1924_s15   ;;  %p2758_p0 = scmp.ne.s32.totalorder %s2748_s22, 0 }
 0x20b   : > { %p2759_p5 = scmp.ge.s32.totalorder %s1936_s18, 2  ;;  %s1321_s7 = scalar_lea.sflag [#allocation4], %s1320_s11 }
 0x20d   : > { %p1658_p11 = pnand %p2759_p5, %p2758_p0 }
 0x20f   : > { %1915 = dma.done.wait (!%p1658_p11), %s1321_s7, 8192  }
 0x210   : > { %1917 = vsyncadd (!%p1658_p11), %s1321_s7, 4294959104  ;;  %s1329_s19 = sand.u32 1, %s1441_s20  }
 0x211   : > { %s1330_s9 = scalar_lea.sflag [#allocation9], %s1329_s19 }
 0x212   : > { %1919 = dma.done.wait (!%p1658_p11), %s1330_s9, 32  }
 0x213   : > { %1921 = vsyncadd (!%p1658_p11), %s1330_s9, 4294967264  ;;  %p22_p12 = scmp.ge.s32.totalorder %s2030_s27, 4   ;;  %s2760_s15 = smov %s1928_s16 }
 0x214   : > { %s2761_s16 = smov %s1932_s17  ;;  %s2762_s17 = smov %s2064_s30 }
 0x215   : > { %s2763_s18 = smov %s2030_s27  ;;  %24 = sbr.rel (!%p22_p12) target bundleno = 8 (0x8), region = 109 }
 0x21c   :  { %1342 = vsyncpa [#allocation3], 1 }
 0x21d   :  { %1344 = vsyncpa [#allocation3 + $0x1], 1 }
 0x21e   :  { %1345 = vsyncpa [#allocation6], 1 }
 0x21f   :  { %1346 = vsyncpa [#allocation4], 1 }
 0x220   :  { %1348 = vsyncpa [#allocation4 + $0x1], 1 }
 0x221   :  { %1349 = vsyncpa [#allocation9], 1 }
 0x222   :  { %1351 = vsyncpa [#allocation9 + $0x1], 1 }

</bundles_post_ra>
